<compile_context>
chip_gen: v6e
topology: v6e:2x2x1
jax: 0.10.0
libtpu: 0.0.40
codegen_flags: <defaults>
</compile_context>

<pallas_src>
import functools

import jax
import jax.numpy as jnp
from jax import lax
from jax.experimental import pallas as pl
from jax.experimental.pallas import tpu as pltpu


def _mlp_kernel(x_ref, w1_ref, b1_ref, w2_ref, b2_ref, o_ref, *, tanh_bf16):
    # x_ref : [TB, F] natural (torch) layout — no wrapper transpose.
    # w1_ref: [Hp, F] compute dtype (torch [out, in] layout, hidden-padded)
    # b1_ref: [Hp, 1] f32    w2_ref: [1, Hp] f32    b2_ref: [1, 1] f32
    # o_ref : [1, TB] f32    (lane-dense logits tile; batch on lanes)
    xv = x_ref[...].astype(w1_ref.dtype)          # free VPU cast if dtypes differ
    # Contract over F of both operands on-chip: result is [Hp, TB] (batch on lanes).
    h = lax.dot_general(
        w1_ref[...], xv,
        dimension_numbers=(((1,), (1,)), ((), ())),
        preferred_element_type=jnp.float32)
    h = h + b1_ref[...]
    if tanh_bf16:
        # v6e/v7x: bf16 EUP tanh is ~2x faster; keep surrounding math in f32.
        h = jnp.tanh(h.astype(jnp.bfloat16)).astype(jnp.float32)
    else:
        # f32 tanh — required on v5e (no bf16 EUP).
        h = jnp.tanh(h)
    out = jnp.dot(w2_ref[...], h, preferred_element_type=jnp.float32) + b2_ref[...]
    o_ref[...] = out.astype(o_ref.dtype)


def prepare_params(w1, b1, w2, b2, *, hidden_pad=56, compute_dtype=jnp.float32):
    """One-time weight preprocessing (hoisted out of the per-call path).

    w1: [H, F] (torch Linear layout [out, in]), b1: [H], w2: [1, H], b2: [1].
    Pads the hidden dim H -> Hp (>= H, multiple of 8) for sublane alignment.
    Padding is exact: padded b1 rows are 0 (tanh(0)=0) and padded w2 columns
    are 0, so the extra rows contribute nothing to the output.
    compute_dtype controls x/w1 dtype on the MXU (f32 or bf16); accumulation
    is always f32, so bf16 is safe on v5e/v6e/v7x alike.
    """
    H, F = w1.shape
    Hp = max(hidden_pad, ((H + 7) // 8) * 8)
    w1_p = jnp.zeros((Hp, F), dtype=compute_dtype).at[:H, :].set(
        w1.astype(compute_dtype))
    b1_p = jnp.zeros((Hp, 1), dtype=jnp.float32).at[:H, 0].set(
        b1.astype(jnp.float32))
    w2_p = jnp.zeros((1, Hp), dtype=jnp.float32).at[:, :H].set(
        w2.astype(jnp.float32))
    b2_p = b2.reshape(1, 1).astype(jnp.float32)
    return (w1_p, b1_p, w2_p, b2_p)


def _pick_batch_tile(B):
    """Batch tile size (second-to-last dim of the x block).

    Small B -> single full-array tile.  Large B -> tile in [512, 4096] rows
    (multiple of 128), targeting >= ~8 grid steps so the "parallel" batch axis
    feeds both v7x TensorCores and double-buffering overlaps DMA with compute.
    A 4096-row f32 x tile is ~784 KiB (double-buffered ~1.6 MiB) + h scratch
    ~0.9 MiB, well under every generation's default scoped-VMEM limit.
    """
    if B <= 1024:
        return B
    target = -(-B // 8)                       # ~8 grid steps
    return max(512, min(4096, ((target + 127) // 128) * 128))


@functools.partial(jax.jit, static_argnames=("bf16_tanh",))
def mlp_forward(x, params, bf16_tanh=False):
    """x: [B, 49] (natural torch layout). Returns logits [B, 1] (pre-sigmoid)."""
    w1_p, b1_p, w2_p, b2_p = params
    B, F = x.shape
    Hp = w1_p.shape[0]
    TB = _pick_batch_tile(B)

    kernel = functools.partial(_mlp_kernel, tanh_bf16=bf16_tanh)

    bytes_accessed = (
        B * F * x.dtype.itemsize                      # dominant: x read
        + B * 4                                       # logits write
        + w1_p.size * w1_p.dtype.itemsize
        + (b1_p.size + w2_p.size + b2_p.size) * 4)
    cost = pl.CostEstimate(
        flops=2 * B * Hp * (F + 1),
        transcendentals=B * Hp,
        bytes_accessed=int(bytes_accessed))

    out = pl.pallas_call(
        kernel,
        out_shape=jax.ShapeDtypeStruct((1, B), jnp.float32),
        grid=(pl.cdiv(B, TB),),
        in_specs=[
            pl.BlockSpec((TB, F), lambda i: (i, 0)),   # x tile (pipelined, natural layout)
            pl.BlockSpec((Hp, F), lambda i: (0, 0)),   # w1 (VMEM-resident)
            pl.BlockSpec((Hp, 1), lambda i: (0, 0)),   # b1 column
            pl.BlockSpec((1, Hp), lambda i: (0, 0)),   # w2 row
            pl.BlockSpec((1, 1), lambda i: (0, 0)),    # b2 scalar
        ],
        out_specs=pl.BlockSpec((1, TB), lambda i: (0, i)),   # lane-dense logits
        compiler_params=pltpu.CompilerParams(
            dimension_semantics=("parallel",)),        # 2nd TC on v7x
        cost_estimate=cost,
    )(x, w1_p, b1_p, w2_p, b2_p)

    return out.reshape(B, 1)                           # free reshape (row-major)


if __name__ == "__main__":
    key = jax.random.PRNGKey(0)
    k_x, k_w1, k_b1, k_w2, k_b2, k_x2 = jax.random.split(key, 6)

    B, F, H = 8, 49, 49          # intermediate_size=49, num_hidden=0

    x = jax.random.normal(k_x, (B, F), dtype=jnp.float32)

    # Deterministic PyTorch-Linear-style init (uniform in +-1/sqrt(fan_in))
    bound1 = 1.0 / (F ** 0.5)
    w1 = jax.random.uniform(k_w1, (H, F), minval=-bound1, maxval=bound1, dtype=jnp.float32)
    b1 = jax.random.uniform(k_b1, (H,), minval=-bound1, maxval=bound1, dtype=jnp.float32)
    bound2 = 1.0 / (H ** 0.5)
    w2 = jax.random.uniform(k_w2, (1, H), minval=-bound2, maxval=bound2, dtype=jnp.float32)
    b2 = jax.random.uniform(k_b2, (1,), minval=-bound2, maxval=bound2, dtype=jnp.float32)

    # Plain-JAX reference (same math as Model.forward: logits, no sigmoid)
    ref = jnp.tanh(x @ w1.T + b1) @ w2.T + b2            # [B, 1]

    # --- f32 path, small batch -------------------------------------------
    params_f32 = prepare_params(w1, b1, w2, b2, compute_dtype=jnp.float32)
    out_f32 = mlp_forward(x, params_f32)
    jax.block_until_ready(out_f32)
    assert out_f32.shape == (B, 1)
    assert jnp.allclose(out_f32, ref, atol=1e-5, rtol=1e-5), "f32 mismatch vs reference"

    # --- bf16-input path (all generations; f32 accumulation & f32 tanh) ---
    params_bf16 = prepare_params(w1, b1, w2, b2, compute_dtype=jnp.bfloat16)
    out_bf16 = mlp_forward(x, params_bf16)
    jax.block_until_ready(out_bf16)
    assert out_bf16.shape == (B, 1)
    assert jnp.allclose(out_bf16, ref, atol=5e-2, rtol=5e-2), "bf16 mismatch vs reference"

    # --- bf16 tanh variant (use on v6e/v7x; keep False on v5e) ------------
    out_bf16t = mlp_forward(x, params_bf16, bf16_tanh=True)
    jax.block_until_ready(out_bf16t)
    assert out_bf16t.shape == (B, 1)
    assert jnp.allclose(out_bf16t, ref, atol=5e-2, rtol=5e-2), "bf16-tanh mismatch vs reference"

    # --- larger batch: exercises multi-step grid + partial last tile ------
    B2 = 1600                                             # TB=512 -> grid=4, last tile partial
    x2 = jax.random.normal(k_x2, (B2, F), dtype=jnp.float32)
    ref2 = jnp.tanh(x2 @ w1.T + b1) @ w2.T + b2
    out2 = mlp_forward(x2, params_f32)
    jax.block_until_ready(out2)
    assert out2.shape == (B2, 1)
    assert jnp.allclose(out2, ref2, atol=1e-5, rtol=1e-5), "tiled f32 mismatch vs reference"

    # TODO(synk): for repeated inference with bf16 weights, store X in bf16 at
    # the source so the dominant x HBM stream is halved (the kernel already
    # accepts any x dtype and casts in-VMEM).
    print("KERNEL_OK")
</pallas_src>

<mosaic_0001>
module attributes {stable_mosaic.version = 11 : i64} {
  func.func @_mlp_kernel(%arg0: i32, %arg1: memref<8x49xf32, #tpu.memory_space<vmem>>, %arg2: memref<56x49xf32, #tpu.memory_space<vmem>>, %arg3: memref<56x1xf32, #tpu.memory_space<vmem>>, %arg4: memref<1x56xf32, #tpu.memory_space<vmem>>, %arg5: memref<1x1xf32, #tpu.memory_space<vmem>>, %arg6: memref<1x8xf32, #tpu.memory_space<vmem>>) attributes {dimension_semantics = [#tpu.dimension_semantics<parallel>], iteration_bounds = array<i64: 1>, scalar_prefetch = 0 : i64, scratch_operands = 0 : i64, tpu.core_type = #tpu.core_type<tc>, window_params = [{transform_indices = @transform_0, window_bounds = array<i64: 8, 49>}, {pipeline_mode = #tpu.pipeline_mode<synchronous>, transform_indices = @transform_1, window_bounds = array<i64: 56, 49>}, {pipeline_mode = #tpu.pipeline_mode<synchronous>, transform_indices = @transform_2, window_bounds = array<i64: 56, 1>}, {pipeline_mode = #tpu.pipeline_mode<synchronous>, transform_indices = @transform_3, window_bounds = array<i64: 1, 56>}, {pipeline_mode = #tpu.pipeline_mode<synchronous>, transform_indices = @transform_4, window_bounds = array<i64: 1, 1>}, {transform_indices = @transform_5, window_bounds = array<i64: 1, 8>}]} {
    %c0 = arith.constant 0 : index
    %c0_0 = arith.constant 0 : index
    %0 = vector.load %arg1[%c0, %c0_0] : memref<8x49xf32, #tpu.memory_space<vmem>>, vector<8x49xf32>
    %c0_1 = arith.constant 0 : index
    %c0_2 = arith.constant 0 : index
    %1 = vector.load %arg2[%c0_1, %c0_2] : memref<56x49xf32, #tpu.memory_space<vmem>>, vector<56x49xf32>
    %cst = arith.constant dense<0.000000e+00> : vector<56x8xf32>
    %2 = tpu.matmul %1, %0, %cst {dimension_numbers = #tpu.dot_dimension_numbers<[1], [1], [0], [0], [0, 0, 1, 0], [], []>} : vector<56x49xf32>, vector<8x49xf32>, vector<56x8xf32> -> vector<56x8xf32>
    %c0_3 = arith.constant 0 : index
    %c0_4 = arith.constant 0 : index
    %3 = vector.load %arg3[%c0_3, %c0_4] : memref<56x1xf32, #tpu.memory_space<vmem>>, vector<56x1xf32>
    %4 = vector.broadcast %3 : vector<56x1xf32> to vector<56x8xf32>
    %5 = arith.addf %2, %4 : vector<56x8xf32>
    %6 = math.tanh %5 : vector<56x8xf32>
    %c0_5 = arith.constant 0 : index
    %c0_6 = arith.constant 0 : index
    %7 = vector.load %arg4[%c0_5, %c0_6] : memref<1x56xf32, #tpu.memory_space<vmem>>, vector<1x56xf32>
    %cst_7 = arith.constant dense<0.000000e+00> : vector<1x8xf32>
    %8 = tpu.matmul %7, %6, %cst_7 {dimension_numbers = #tpu.dot_dimension_numbers<[1], [0], [0], [1], [0, 0, 1, 1], [], []>} : vector<1x56xf32>, vector<56x8xf32>, vector<1x8xf32> -> vector<1x8xf32>
    %c0_8 = arith.constant 0 : index
    %c0_9 = arith.constant 0 : index
    %9 = vector.load %arg5[%c0_8, %c0_9] : memref<1x1xf32, #tpu.memory_space<vmem>>, vector<1x1xf32>
    %10 = vector.broadcast %9 : vector<1x1xf32> to vector<1x8xf32>
    %11 = arith.addf %8, %10 : vector<1x8xf32>
    %c0_10 = arith.constant 0 : index
    %c0_11 = arith.constant 0 : index
    %12 = vector.load %arg6[%c0_10, %c0_11] : memref<1x8xf32, #tpu.memory_space<vmem>>, vector<1x8xf32>
    tpu.vector_store %arg6[%c0_10, %c0_11], %11 {strides = array<i32>} : memref<1x8xf32, #tpu.memory_space<vmem>>, vector<1x8xf32>,
    return
  }
  func.func @transform_0(%arg0: i32) -> (i32, i32) {
    %c0_i32 = arith.constant 0 : i32
    %c0_i32_0 = arith.constant 0 : i32
    return %arg0, %c0_i32 : i32, i32
  }
  func.func @transform_1(%arg0: i32) -> (i32, i32) {
    %c0_i32 = arith.constant 0 : i32
    %c0_i32_0 = arith.constant 0 : i32
    %c0_i32_1 = arith.constant 0 : i32
    return %c0_i32, %c0_i32_0 : i32, i32
  }
  func.func @transform_2(%arg0: i32) -> (i32, i32) {
    %c0_i32 = arith.constant 0 : i32
    %c0_i32_0 = arith.constant 0 : i32
    %c0_i32_1 = arith.constant 0 : i32
    return %c0_i32, %c0_i32_0 : i32, i32
  }
  func.func @transform_3(%arg0: i32) -> (i32, i32) {
    %c0_i32 = arith.constant 0 : i32
    %c0_i32_0 = arith.constant 0 : i32
    %c0_i32_1 = arith.constant 0 : i32
    return %c0_i32, %c0_i32_0 : i32, i32
  }
  func.func @transform_4(%arg0: i32) -> (i32, i32) {
    %c0_i32 = arith.constant 0 : i32
    %c0_i32_0 = arith.constant 0 : i32
    %c0_i32_1 = arith.constant 0 : i32
    return %c0_i32, %c0_i32_0 : i32, i32
  }
  func.func @transform_5(%arg0: i32) -> (i32, i32) {
    %c0_i32 = arith.constant 0 : i32
    %c0_i32_0 = arith.constant 0 : i32
    return %c0_i32, %arg0 : i32, i32
  }
}

</mosaic_0001>

<bundles_post_ra>
// kernel: mlp_forward.1
= control target key start
LH: loop header
LB: loop body
LE: loop exit
PB: predicated region body
PF: predicated region fallthrough
CT: control target
= control target key end

     0   :  { %s570_s0 = inlined_call_operand.hbm [shape: f32[8,49], index: 0, kind: input, shape index: {}]   ;;  %s571_s1 = inlined_call_operand.vmem [shape: f32[56,49], index: 1, kind: input, shape index: {}]   ;;  %s572_s2 = inlined_call_operand.vmem [shape: f32[56,1], index: 2, kind: input, shape index: {}]   ;;  %s573_s3 = inlined_call_operand.vmem [shape: f32[1,56], index: 3, kind: input, shape index: {}]   ;;  %s574_s4 = inlined_call_operand.<no memory space> [shape: f32[1,1], index: 4, kind: input, shape index: {}]   ;;  %s575_s5 = inlined_call_operand.hbm [shape: f32[1,8], index: 5, kind: output, shape index: {}]  }
   0x1   :  { %v10_v0 = vstv %s574_s4 }
   0x2   :  { %11 = vst [vmem:[#allocation2] sm:$0x1] %v10_v0 }
   0x3   :  { %12 = vsyncpa [#allocation4], 0 }
   0x4   :  { %13 = vsyncpa [#allocation5], 0  ;;  %s449_s20 = smov [#allocation3]  }
   0x5   :  { %s20_s21 = sshll.u32 %s449_s20, 4  ;;  %s21_s21 = int_to_ptr.vmem [resolvable:$true] %s20_s21 }
   0x6   :  { %s413_s22 = scalar_lea.vmem %s21_s21, 128  ;;  %p418_p1 = scmp.lt.s32.totalorder %s21_s21, %s21_s21 }
   0x7   :  { %p414_p0 = scmp.ne.s32.totalorder %s21_s21, %s413_s22  ;;  %p419_p2 = scmp.lt.s32.totalorder %s413_s22, %s413_s22 }
   0x9   :  { %p420_p3 = por %p419_p2, %p418_p1 }
   0xb   :  { %p421_p4 = pnand %p420_p3, %p414_p0 }
   0xd   :  { %424 = shalt.err (!%p421_p4)
}
   0xe   :  { %23 = dma.hbm_to_vmem [thread:$0]  %s570_s0, 128, %s21_s21, [#allocation4]  }
   0xf   :  { %445 = dma.done.wait [#allocation4], 128  }
  0x10   :  { %446 = vsyncadd [#allocation4], 4294967168  ;;  %v450_v1 = vmov 0.0   ;;  %vm451_vm0 = vmmov 0   ;;  %v452_v2 = vmov 0   ;;  %vm85_vm1 = vcmask 400384  }
  0x11   :  { %344 = vmatprep.subr.mxu0 %v450_v1  ;;  %346 = vmatprep.mubr.msk.f32.mxu0 %vm451_vm0, %v450_v1  ;;  %v35_v3 = vld [vmem:[#allocation3] sm:$0xff]  ;;  %v49_v5 = vld [vmem:[%s572_s2 + $0x30] sm:$0xff]  ;;  %v46_v9 = vld [vmem:[%s572_s2 + $0x18] sm:$0xff]  ;;  %vm228_vm2 = vcmask 457728   ;;  %v224_v55 = vlaneseq  ;;  %s453_s4 = smov [#allocation6]   ;;  %vm302_vm3 = vcmask 57344  }
  0x12   :  { %389 = vset.pattern.permute.xlu0 %v452_v2  ;;  %390 = vset.pattern.permute.xlu1 %v452_v2  ;;  %v36_v4 = vld [vmem:[%s571_s1] sm:$0xff]  ;;  %v48_v7 = vld [vmem:[%s572_s2 + $0x28] sm:$0xff]  ;;  %v45_v10 = vld [vmem:[%s572_s2 + $0x10] sm:$0xff]  ;;  %s310_s25 = sshll.u32 %s453_s4, 4  ;;  %s311_s25 = int_to_ptr.vmem [resolvable:$true] %s310_s25 }
  0x13   :  { %367 = vmatprep.subr.mxu1 %v450_v1  ;;  %381 = vmatprep.mubr.msk.f32.mxu1 %vm451_vm0, %v450_v1  ;;  %v47_v6 = vld [vmem:[%s572_s2 + $0x20] sm:$0xff]  ;;  %v37_v8 = vld [vmem:[%s571_s1 + $0x8] sm:$0xff]  ;;  %v38_v11 = vld [vmem:[%s571_s1 + $0x10] sm:$0xff]  ;;  %v225_v56 = vshrl.u32 %v224_v55, 7  ;;  %s429_s26 = scalar_lea.vmem %s311_s25, 32  ;;  %p430_p6 = scmp.lt.s32.totalorder %s311_s25, %s311_s25 }
  0x14   :  { %345 = vmatpush3.xpose.msk.msra.mxu0 %vm85_vm1, %v35_v3  ;;  %82 = vperm.xlu0 %389, %v49_v5   ;;  %v44_v12 = vld [vmem:[%s572_s2 + $0x8] sm:$0xff]  ;;  %v43_v13 = vld [vmem:[%s572_s2] sm:$0xff]  ;;  %v39_v14 = vld [vmem:[%s571_s1 + $0x18] sm:$0xff] }
  0x15   :  { %72 = vperm.xlu1 %390, %v47_v6   ;;  %v218_v15 = vld [vmem:[#allocation2] sm:$0x1]  ;;  %v41_v17 = vld [vmem:[%s571_s1 + $0x28] sm:$0xff]  ;;  %v42_v18 = vld [vmem:[%s571_s1 + $0x30] sm:$0xff]  ;;  %v226_v57 = vsub.s32 0, %v225_v56 }
  0x16   :  { %v40_v16 = vld [vmem:[%s571_s1 + $0x20] sm:$0xff] }
  0x17   :  { %347 = vmatmul.mubr.msk.f32.vlgmr.msra.gmra.mxu0 %vm85_vm1, %v36_v4  ;;  %v217_v53 = vld [vmem:[%s573_s3] sm:$0x1]  ;;  %s425_s3 = scalar_lea.vmem %s311_s25, 16 }
  0x18   :  { %349 = vmatprep.mubr.msk.f32.mxu0 %vm451_vm0, %v450_v1  ;;  %77 = vperm.xlu0 %389, %v48_v7   ;;  %p426_p5 = scmp.ne.s32.totalorder %s311_s25, %s425_s3  ;;  %p431_p7 = scmp.lt.s32.totalorder %s429_s26, %s425_s3 }
  0x19   :  { %67 = vperm.xlu1 %390, %v46_v9  }
  0x1a   :  { %p432_p8 = por %p431_p7, %p430_p6 }
  0x1b   :  { %350 = vmatmul.mubr.msk.f32.gmra.mxu0 %vm85_vm1, %v37_v8 }
  0x1c   :  { %352 = vmatprep.mubr.msk.f32.mxu0 %vm451_vm0, %v450_v1  ;;  %62 = vperm.xlu0 %389, %v45_v10   ;;  %p433_p9 = pnand %p432_p8, %p426_p5 }
  0x1d   :  { %57 = vperm.xlu1 %390, %v44_v12  }
  0x1f   :  { %353 = vmatmul.mubr.msk.f32.gmra.mxu0 %vm85_vm1, %v38_v11 }
  0x20   :  { %355 = vmatprep.mubr.msk.f32.mxu0 %vm451_vm0, %v450_v1  ;;  %52 = vperm.xlu0 %389, %v43_v13  }
  0x21   :  { %221 = vperm.xlu1 %390, %v218_v15  }
  0x23   :  { %356 = vmatmul.mubr.msk.f32.gmra.mxu0 %vm85_vm1, %v39_v14 }
  0x24   :  { %358 = vmatprep.mubr.msk.f32.mxu0 %vm451_vm0, %v450_v1 }
  0x27   :  { %359 = vmatmul.mubr.msk.f32.gmra.mxu0 %vm85_vm1, %v40_v16 }
  0x28   :  { %361 = vmatprep.mubr.msk.f32.mxu0 %vm451_vm0, %v450_v1 }
  0x2b   :  { %362 = vmatmul.mubr.msk.f32.gmra.mxu0 %vm85_vm1, %v41_v17 }
  0x2c   :  { %364 = vmatprep.mubr.msk.f32.mxu0 %vm451_vm0, %v450_v1 }
  0x2f   :  { %365 = vmatmul.mubr.msk.f32.gmra.mxu0 %vm85_vm1, %v42_v18 }
  0x8f   :  { %v83_v26 = vpop.permute.xlu0 %82 }
  0x90   :  { %v73_v29 = vpop.permute.xlu1 %72 }
  0x93   :  { %v78_v31 = vpop.permute.xlu0 %77 }
  0x94   :  { %v68_v34 = vpop.permute.xlu1 %67 }
  0x97   :  { %v63_v38 = vpop.permute.xlu0 %62 }
  0x98   :  { %v58_v42 = vpop.permute.xlu1 %57 }
  0x9b   :  { %v53_v44 = vpop.permute.xlu0 %52 }
  0x9c   :  { %v222_v58 = vpop.permute.xlu1 %221 }
  0x9d   :  { %v227_v59 = vrot.slane %v222_v58, %v226_v57 }
  0xd7   :  { %v176_v19 = vpop.f32.mrf.mxu0 }
  0xd8   :  { %v177_v46 = vadd.f32 %v176_v19, %v53_v44 }
  0xd9   :  { %v348_v20 = vpop.f32.mrf.mxu0 }
  0xdb   :  { %v181_v21 = vpop.f32.mrf.mxu0 }
  0xdc   :  { %v182_v45 = vadd.f32 %v181_v21, %v58_v42 }
  0xdd   :  { %v351_v22 = vpop.f32.mrf.mxu0 }
  0xdf   :  { %v186_v23 = vpop.f32.mrf.mxu0 }
  0xe0   :  { %v187_v43 = vadd.f32 %v186_v23, %v63_v38 }
  0xe1   :  { %v354_v24 = vpop.f32.mrf.mxu0 }
  0xe3   :  { %v191_v25 = vpop.f32.mrf.mxu0 }
  0xe4   :  { %v192_v41 = vadd.f32 %v191_v25, %v68_v34 }
  0xe5   :  { %v357_v27 = vpop.f32.mrf.mxu0 }
  0xe7   :  { %v196_v28 = vpop.f32.mrf.mxu0 }
  0xe8   :  { %v197_v40 = vadd.f32 %v196_v28, %v73_v29 }
  0xe9   :  { %v360_v30 = vpop.f32.mrf.mxu0 }
  0xeb   :  { %v201_v32 = vpop.f32.mrf.mxu0 }
  0xec   :  { %v202_v36 = vadd.f32 %v201_v32, %v78_v31 }
  0xed   :  { %v363_v33 = vpop.f32.mrf.mxu0 }
  0xef   :  { %v206_v35 = vpop.f32.mrf.mxu0 }
  0xf0   :  { %v207_v37 = vadd.f32 %v206_v35, %v83_v26 }
  0xf1   :  { %v366_v39 = vpop.f32.mrf.mxu0 }
  0xf2   :  { %391 = vtanh.f32 %v207_v37 }
  0xf3   :  { %393 = vtanh.f32 %v202_v36 }
  0xf4   :  { %395 = vtanh.f32 %v197_v40 }
  0xf5   :  { %397 = vtanh.f32 %v192_v41 }
  0xf6   :  { %399 = vtanh.f32 %v187_v43 }
  0xf7   :  { %401 = vtanh.f32 %v182_v45 }
  0xf8   :  { %403 = vtanh.f32 %v177_v46 }
  0xff   :  { %v392_v47 = vpop.eup %391 }
 0x100   :  { %368 = vmatpush3.msra.mxu1 %v392_v47  ;;  %v394_v48 = vpop.eup %393 }
 0x101   :  { %369 = vmatprep.subr.mxu1 %v450_v1  ;;  %v396_v49 = vpop.eup %395 }
 0x102   :  { %370 = vmatpush3.msra.mxu1 %v394_v48  ;;  %v398_v50 = vpop.eup %397 }
 0x103   :  { %371 = vmatprep.subr.mxu1 %v450_v1  ;;  %v400_v51 = vpop.eup %399 }
 0x104   :  { %372 = vmatpush3.msra.mxu1 %v396_v49  ;;  %v402_v52 = vpop.eup %401 }
 0x105   :  { %373 = vmatprep.subr.mxu1 %v450_v1  ;;  %v404_v54 = vpop.eup %403 }
 0x106   :  { %374 = vmatpush3.msra.mxu1 %v398_v50 }
 0x107   :  { %375 = vmatprep.subr.mxu1 %v450_v1 }
 0x108   :  { %376 = vmatpush3.msra.mxu1 %v400_v51 }
 0x109   :  { %377 = vmatprep.subr.mxu1 %v450_v1 }
 0x10a   :  { %378 = vmatpush3.msra.mxu1 %v402_v52 }
 0x10b   :  { %379 = vmatprep.subr.mxu1 %v450_v1 }
 0x10c   :  { %380 = vmatpush3.msra.mxu1 %v404_v54 }
 0x10d   :  { %382 = vmatmul.mubr.msk.f32.vlgmr.msra.gmra.mxu1 %vm228_vm2, %v217_v53 }
 0x1cd   :  { %v298_v60 = vpop.f32.mrf.mxu1 }
 0x1ce   :  { %v299_v61 = vadd.f32 %v298_v60, %v227_v59 }
 0x1cf   :  { %v383_v62 = vpop.f32.mrf.mxu1 }
 0x1d0   :  { %303 = vst.msk [vmem:[#allocation6] sm:$0x1] %vm302_vm3, %v299_v61 }
 0x1d1   :  { %436 = shalt.err (!%p433_p9)
}
 0x1d2   :  { %313 = dma.vmem_to_hbm [thread:$0]  %s311_s25, 16, %s575_s5, [#allocation5]  }
 0x1d3   :  { %447 = dma.done.wait [#allocation5], 16  }
 0x1d4   :  { %448 = vsyncadd [#allocation5], 4294967280 }
 0x1d5   :  { %317 = vsyncpa [#allocation4], 1 }
 0x1d6   :  { %318 = vsyncpa [#allocation5], 1 }

</bundles_post_ra>
